<compile_context>
chip_gen: v7x
topology: tpu7x:2x2x1
jax: 0.10.0
libtpu: 0.0.40
codegen_flags: <defaults>
</compile_context>

<pallas_src>
import jax
import jax.numpy as jnp
from jax import lax
from jax.experimental import pallas as pl
from jax.experimental.pallas import tpu as pltpu

# Model hyper-parameters (small, deterministic; match the PyTorch module).
n_class = 32    # vocabulary size
m = 8           # embedding dim
n_steps = 4     # context length
n_hidden = 32   # hidden units
BATCH = 8

N_X = n_steps * m          # 32   flattened context embedding width
N_PAD = 128                # lane-pad n_hidden / n_class to a full vreg width
N_OH = n_steps * n_class   # 128  one-hot width (exactly one vreg)


def nnlm_kernel(idx_ref, chw_ref, u_ref, db_ref, o_ref):
    # idx_ref : VMEM (B, n_steps) int32        token ids
    # chw_ref : VMEM (N_OH, 2*N_PAD) bf16      blockdiag(C,..,C) @ [H | W]
    # u_ref   : VMEM (N_PAD, N_PAD) bf16       U pre-transposed, zero-padded
    # db_ref  : VMEM (2, N_PAD) f32            row 0 = d (padded), row 1 = b (padded)
    # o_ref   : VMEM (B, N_PAD) f32            lane-dense padded logits
    B = idx_ref.shape[0]

    # Clamp ids so an out-of-range token can only select a valid table row
    # (PyTorch semantics are undefined / error in that case anyway).
    idx = jnp.clip(idx_ref[...], 0, n_class - 1)                   # (B, n_steps)

    # Build the (B, 128) one-hot selector on the VPU: lane s*n_class + idx[b,s]
    # is 1 for each context step s.  Fully vectorized, n_steps=4 compares.
    lane = lax.broadcasted_iota(jnp.int32, (B, N_OH), 1)           # (B, 128)
    oh = jnp.zeros((B, N_OH), jnp.float32)
    for s in range(n_steps):
        tgt = idx[:, s:s + 1] + s * n_class                        # (B, 1)
        oh = oh + (lane == tgt).astype(jnp.float32)
    oh = oh.astype(jnp.bfloat16)

    # Single MXU push: embedding gather + flatten + both x-projections.
    #   columns [0, 128)   -> H contribution (hidden pre-activation)
    #   columns [128, 256) -> W contribution (direct logits path)
    xm = jnp.dot(oh, chw_ref[...], preferred_element_type=jnp.float32)  # (B, 256)
    hidden = xm[:, :N_PAD]
    wproj = xm[:, N_PAD:]

    d_row = db_ref[0:1, :]          # (1, N_PAD)
    b_row = db_ref[1:2, :]          # (1, N_PAD)

    # f32 elementwise on VPU/EUP; padded lanes stay exactly 0 (d padded with 0,
    # HW/U padded with 0), so they contribute nothing.
    t = jnp.tanh(d_row + hidden)                                   # (B, 128)

    uproj = jnp.dot(t.astype(jnp.bfloat16), u_ref[...],
                    preferred_element_type=jnp.float32)            # (B, 128)

    o_ref[...] = b_row + wproj + uproj


def pack_params(params):
    """One-time weight transform: fold C into [H|W], pre-transpose, pad, bf16."""
    C, H_t, d, U_t, W_t, b = params

    # [H | W] packed column-wise, lane-padded to 2 * N_PAD.
    hw = jnp.zeros((N_X, 2 * N_PAD), jnp.float32)
    hw = hw.at[:, :n_hidden].set(H_t)
    hw = hw.at[:, N_PAD:N_PAD + n_class].set(W_t)

    # CHW[s*n_class + v, :] = C[v, :] @ HW[s*m:(s+1)*m, :]
    # (== blockdiag(C, C, C, C) @ HW).  one_hot @ CHW reproduces
    # gather + flatten + x @ [H|W] exactly.
    chw = jnp.concatenate(
        [C @ hw[s * m:(s + 1) * m, :] for s in range(n_steps)], axis=0)  # (128, 256)

    u = jnp.zeros((N_PAD, N_PAD), jnp.float32)
    u = u.at[:n_hidden, :n_class].set(U_t)

    db = jnp.zeros((2, N_PAD), jnp.float32)
    db = db.at[0, :n_hidden].set(d)
    db = db.at[1, :n_class].set(b)

    return (chw.astype(jnp.bfloat16), u.astype(jnp.bfloat16), db)


def nnlm_forward_padded(X_idx, packed):
    """X_idx: (B, n_steps) int32 token ids -> (B, N_PAD) f32 lane-dense padded
    logits (columns [n_class, N_PAD) are zero).  Slice in the caller's jit."""
    chw, u, db = packed
    B = X_idx.shape[0]

    vmem = pltpu.MemorySpace.VMEM
    return pl.pallas_call(
        nnlm_kernel,
        out_shape=jax.ShapeDtypeStruct((B, N_PAD), jnp.float32),
        in_specs=[
            pl.BlockSpec(memory_space=vmem),   # idx  (B, n_steps) i32
            pl.BlockSpec(memory_space=vmem),   # chw  (128, 256)   bf16
            pl.BlockSpec(memory_space=vmem),   # u    (128, 128)   bf16
            pl.BlockSpec(memory_space=vmem),   # db   (2, 128)     f32
        ],
        out_specs=pl.BlockSpec(memory_space=vmem),
    )(X_idx.astype(jnp.int32), chw, u, db)


def init_params(key):
    k1, k2, k3, k4 = jax.random.split(key, 4)
    C = jax.random.normal(k1, (n_class, m), jnp.float32) * 0.1
    # Linear weights stored pre-transposed: (in_features, out_features).
    H_t = jax.random.normal(k2, (N_X, n_hidden), jnp.float32) * 0.1
    U_t = jax.random.normal(k3, (n_hidden, n_class), jnp.float32) * 0.1
    W_t = jax.random.normal(k4, (N_X, n_class), jnp.float32) * 0.1
    d = jnp.ones((n_hidden,), jnp.float32)   # nn.Parameter(torch.ones(n_hidden))
    b = jnp.ones((n_class,), jnp.float32)    # nn.Parameter(torch.ones(n_class))
    return (C, H_t, d, U_t, W_t, b)


def nnlm_reference(X_idx, params):
    C, H_t, d, U_t, W_t, b = params
    x = jnp.take(C, X_idx, axis=0).reshape(X_idx.shape[0], N_X)
    tanh = jnp.tanh(d + x @ H_t)
    return b + x @ W_t + tanh @ U_t


if __name__ == "__main__":
    key = jax.random.PRNGKey(0)
    kp, kx = jax.random.split(key)
    params = init_params(kp)
    packed = pack_params(params)
    X_idx = jax.random.randint(kx, (BATCH, n_steps), 0, n_class, dtype=jnp.int32)

    @jax.jit
    def forward(idx, packed):
        # The [:, :n_class] slice lives inside the same jit region as the
        # kernel, so it is not a standalone dispatch.
        return nnlm_forward_padded(idx, packed)[:, :n_class]

    out = forward(X_idx, packed)
    jax.block_until_ready(out)

    ref = nnlm_reference(X_idx, params)
    assert out.shape == (BATCH, n_class)
    # Kernel feeds the MXU bf16 operands (f32 accumulation), so compare against
    # the pure-f32 reference with a bf16-appropriate tolerance.
    assert jnp.allclose(out, ref, atol=3e-2, rtol=3e-2), "mismatch vs reference"

    print("KERNEL_OK")
</pallas_src>

<mosaic_0001>
module attributes {stable_mosaic.version = 11 : i64} {
  func.func @nnlm_kernel(%arg0: memref<8x4xi32, #tpu.memory_space<vmem>>, %arg1: memref<128x256xbf16, #tpu.memory_space<vmem>>, %arg2: memref<128x128xbf16, #tpu.memory_space<vmem>>, %arg3: memref<2x128xf32, #tpu.memory_space<vmem>>, %arg4: memref<8x128xf32, #tpu.memory_space<vmem>>) attributes {dimension_semantics = [], scalar_prefetch = 0 : i64, scratch_operands = 0 : i64, tpu.core_type = #tpu.core_type<tc>} {
    %c0 = arith.constant 0 : index
    %c0_0 = arith.constant 0 : index
    %0 = vector.load %arg0[%c0, %c0_0] : memref<8x4xi32, #tpu.memory_space<vmem>>, vector<8x4xi32>
    %c0_i32 = arith.constant 0 : i32
    %c31_i32 = arith.constant 31 : i32
    %1 = vector.broadcast %c0_i32 : i32 to vector<8x4xi32>
    %2 = arith.maxsi %1, %0 : vector<8x4xi32>
    %3 = vector.broadcast %c31_i32 : i32 to vector<8x4xi32>
    %4 = arith.minsi %3, %2 : vector<8x4xi32>
    %5 = tpu.iota {dimensions = array<i32: 1>} : vector<8x128xi32>
    %cst = arith.constant 0.000000e+00 : f32
    %6 = vector.broadcast %cst : f32 to vector<8x128xf32>
    %7 = vector.extract_strided_slice %4 {offsets = [0, 0], sizes = [8, 1], strides = [1, 1]} : vector<8x4xi32> to vector<8x1xi32>
    %c0_i32_1 = arith.constant 0 : i32
    %8 = vector.broadcast %c0_i32_1 : i32 to vector<8x1xi32>
    %9 = arith.addi %7, %8 : vector<8x1xi32>
    %10 = vector.broadcast %9 : vector<8x1xi32> to vector<8x128xi32>
    %11 = arith.cmpi eq, %5, %10 : vector<8x128xi32>
    %12 = arith.extui %11 : vector<8x128xi1> to vector<8x128xi32>
    %13 = arith.sitofp %12 : vector<8x128xi32> to vector<8x128xf32>
    %14 = arith.addf %6, %13 : vector<8x128xf32>
    %15 = vector.extract_strided_slice %4 {offsets = [0, 1], sizes = [8, 1], strides = [1, 1]} : vector<8x4xi32> to vector<8x1xi32>
    %c32_i32 = arith.constant 32 : i32
    %16 = vector.broadcast %c32_i32 : i32 to vector<8x1xi32>
    %17 = arith.addi %15, %16 : vector<8x1xi32>
    %18 = vector.broadcast %17 : vector<8x1xi32> to vector<8x128xi32>
    %19 = arith.cmpi eq, %5, %18 : vector<8x128xi32>
    %20 = arith.extui %19 : vector<8x128xi1> to vector<8x128xi32>
    %21 = arith.sitofp %20 : vector<8x128xi32> to vector<8x128xf32>
    %22 = arith.addf %14, %21 : vector<8x128xf32>
    %23 = vector.extract_strided_slice %4 {offsets = [0, 2], sizes = [8, 1], strides = [1, 1]} : vector<8x4xi32> to vector<8x1xi32>
    %c64_i32 = arith.constant 64 : i32
    %24 = vector.broadcast %c64_i32 : i32 to vector<8x1xi32>
    %25 = arith.addi %23, %24 : vector<8x1xi32>
    %26 = vector.broadcast %25 : vector<8x1xi32> to vector<8x128xi32>
    %27 = arith.cmpi eq, %5, %26 : vector<8x128xi32>
    %28 = arith.extui %27 : vector<8x128xi1> to vector<8x128xi32>
    %29 = arith.sitofp %28 : vector<8x128xi32> to vector<8x128xf32>
    %30 = arith.addf %22, %29 : vector<8x128xf32>
    %31 = vector.extract_strided_slice %4 {offsets = [0, 3], sizes = [8, 1], strides = [1, 1]} : vector<8x4xi32> to vector<8x1xi32>
    %c96_i32 = arith.constant 96 : i32
    %32 = vector.broadcast %c96_i32 : i32 to vector<8x1xi32>
    %33 = arith.addi %31, %32 : vector<8x1xi32>
    %34 = vector.broadcast %33 : vector<8x1xi32> to vector<8x128xi32>
    %35 = arith.cmpi eq, %5, %34 : vector<8x128xi32>
    %36 = arith.extui %35 : vector<8x128xi1> to vector<8x128xi32>
    %37 = arith.sitofp %36 : vector<8x128xi32> to vector<8x128xf32>
    %38 = arith.addf %30, %37 : vector<8x128xf32>
    %39 = arith.truncf %38 : vector<8x128xf32> to vector<8x128xbf16>
    %c0_2 = arith.constant 0 : index
    %c0_3 = arith.constant 0 : index
    %40 = vector.load %arg1[%c0_2, %c0_3] : memref<128x256xbf16, #tpu.memory_space<vmem>>, vector<128x256xbf16>
    %cst_4 = arith.constant dense<0.000000e+00> : vector<8x256xf32>
    %41 = tpu.matmul %39, %40, %cst_4 {dimension_numbers = #tpu.dot_dimension_numbers<[1], [0], [0], [1], [0, 0, 1, 1], [], []>} : vector<8x128xbf16>, vector<128x256xbf16>, vector<8x256xf32> -> vector<8x256xf32>
    %42 = vector.extract_strided_slice %41 {offsets = [0, 0], sizes = [8, 128], strides = [1, 1]} : vector<8x256xf32> to vector<8x128xf32>
    %43 = vector.extract_strided_slice %41 {offsets = [0, 128], sizes = [8, 128], strides = [1, 1]} : vector<8x256xf32> to vector<8x128xf32>
    %c0_5 = arith.constant 0 : index
    %c0_6 = arith.constant 0 : index
    %44 = vector.load %arg3[%c0_5, %c0_6] : memref<2x128xf32, #tpu.memory_space<vmem>>, vector<1x128xf32>
    %c1 = arith.constant 1 : index
    %c0_7 = arith.constant 0 : index
    %45 = vector.load %arg3[%c1, %c0_7] : memref<2x128xf32, #tpu.memory_space<vmem>>, vector<1x128xf32>
    %46 = vector.broadcast %44 : vector<1x128xf32> to vector<8x128xf32>
    %47 = arith.addf %46, %42 : vector<8x128xf32>
    %48 = math.tanh %47 : vector<8x128xf32>
    %49 = arith.truncf %48 : vector<8x128xf32> to vector<8x128xbf16>
    %c0_8 = arith.constant 0 : index
    %c0_9 = arith.constant 0 : index
    %50 = vector.load %arg2[%c0_8, %c0_9] : memref<128x128xbf16, #tpu.memory_space<vmem>>, vector<128x128xbf16>
    %cst_10 = arith.constant dense<0.000000e+00> : vector<8x128xf32>
    %51 = tpu.matmul %49, %50, %cst_10 {dimension_numbers = #tpu.dot_dimension_numbers<[1], [0], [0], [1], [0, 0, 1, 1], [], []>} : vector<8x128xbf16>, vector<128x128xbf16>, vector<8x128xf32> -> vector<8x128xf32>
    %52 = vector.broadcast %45 : vector<1x128xf32> to vector<8x128xf32>
    %53 = arith.addf %52, %43 : vector<8x128xf32>
    %54 = arith.addf %53, %51 : vector<8x128xf32>
    %c0_11 = arith.constant 0 : index
    %c0_12 = arith.constant 0 : index
    %55 = vector.load %arg4[%c0_11, %c0_12] : memref<8x128xf32, #tpu.memory_space<vmem>>, vector<8x128xf32>
    tpu.vector_store %arg4[%c0_11, %c0_12], %54 {strides = array<i32>} : memref<8x128xf32, #tpu.memory_space<vmem>>, vector<8x128xf32>,
    return
  }
}

</mosaic_0001>

<bundles_post_ra>
// kernel: forward.1
= control target key start
LH: loop header
LB: loop body
LE: loop exit
PB: predicated region body
PF: predicated region fallthrough
CT: control target
= control target key end

     0   :  { %9 = vsyncpa [#allocation3], 0  ;;  %s638_s0 = inlined_call_operand.vmem [shape: s32[8,4], index: 0, kind: input, shape index: {}]   ;;  %s639_s1 = inlined_call_operand.hbm [shape: bf16[128,256], index: 1, kind: input, shape index: {}]   ;;  %s640_s2 = inlined_call_operand.hbm [shape: bf16[128,128], index: 2, kind: input, shape index: {}]   ;;  %s641_s3 = inlined_call_operand.vmem [shape: f32[2,128], index: 3, kind: input, shape index: {}]   ;;  %s642_s4 = inlined_call_operand.hbm [shape: f32[8,128], index: 4, kind: output, shape index: {}]  }
   0x1   :  { %10 = vsyncpa [#allocation6], 0 }
   0x2   :  { %11 = vsyncpa [#allocation4], 0  ;;  %s542_s15 = smov [#allocation2]   ;;  %s470_s19 = scalar_lea.hbm %s639_s1, 2048 }
   0x3   :  { %s19_s16 = sshll.u32 %s542_s15, 4  ;;  %p471_p0 = scmp.ne.s32.totalorder %s639_s1, %s470_s19  ;;  %s20_s16 = int_to_ptr.vmem [resolvable:$true] %s19_s16 }
   0x4   :  { %p474_p1 = scmp.lt.u32.totalorder %s470_s19, %s639_s1 }
   0x6   :  { %p476_p2 = pnand %p474_p1, %p471_p0 }
   0x8   :  { %479 = shalt.err (!%p476_p2)
}
   0x9   :  { %s480_s24 = scalar_lea.vmem %s20_s16, 2048  ;;  %p485_p4 = scmp.lt.s32.totalorder %s20_s16, %s20_s16 }
   0xa   :  { %p481_p3 = scmp.ne.s32.totalorder %s20_s16, %s480_s24  ;;  %p486_p5 = scmp.lt.s32.totalorder %s480_s24, %s480_s24 }
   0xc   :  { %p487_p6 = por %p486_p5, %p485_p4 }
   0xe   :  { %p488_p7 = pnand %p487_p6, %p481_p3 }
  0x10   :  { %491 = shalt.err (!%p488_p7)
}
  0x11   :  { %s543_s25 = smov 128   ;;  %s544_s26 = smov 8  }
  0x12   :  { %25 = dma.hbm_to_vmem [thread:$0]  %s639_s1, 2048, %s20_s16, [#allocation3], %s543_s25, %s543_s25, %s544_s26  }
  0x13   :  { %s545_s29 = smov [#allocation5]   ;;  %s492_s7 = scalar_lea.hbm %s640_s2, 1024 }
  0x14   :  { %s31_s30 = sshll.u32 %s545_s29, 4  ;;  %p493_p8 = scmp.ne.s32.totalorder %s640_s2, %s492_s7  ;;  %s32_s30 = int_to_ptr.vmem [resolvable:$true] %s31_s30 }
  0x15   :  { %p496_p9 = scmp.lt.u32.totalorder %s492_s7, %s640_s2 }
  0x17   :  { %p498_p10 = pnand %p496_p9, %p493_p8 }
  0x19   :  { %501 = shalt.err (!%p498_p10)
}
  0x1a   :  { %s502_s12 = scalar_lea.vmem %s32_s30, 1024  ;;  %p507_p12 = scmp.lt.s32.totalorder %s32_s30, %s32_s30 }
  0x1b   :  { %p503_p11 = scmp.ne.s32.totalorder %s32_s30, %s502_s12  ;;  %p508_p13 = scmp.lt.s32.totalorder %s502_s12, %s502_s12 }
  0x1d   :  { %p509_p0 = por %p508_p13, %p507_p12 }
  0x1f   :  { %p510_p1 = pnand %p509_p0, %p503_p11 }
  0x21   :  { %513 = shalt.err (!%p510_p1)
}
  0x22   :  { %s546_s1 = smov 64   ;;  %s547_s13 = smov 4  }
  0x23   :  { %37 = dma.hbm_to_vmem [thread:$0]  %s640_s2, 1024, %s32_s30, [#allocation6], %s546_s1, %s546_s1, %s547_s13  }
  0x24   :  { %536 = dma.done.wait [#allocation3], 2048  }
  0x25   :  { %537 = vsyncadd [#allocation3], 4294965248 }
  0x26   :  { %538 = dma.done.wait [#allocation6], 1024  }
  0x27   :  { %539 = vsyncadd [#allocation6], 4294966272  ;;  %v548_v0 = vmov 0   ;;  %v549_v1 = vmov 2   ;;  %v550_v2 = vmov 0.0   ;;  %v47_v3 = vld [vmem:[%s638_s0] sm:$0xff]  ;;  %v52_v31 = vlaneseq }
  0x28   :  { %431 = vset.pattern.permute.xlu0 %v548_v0  ;;  %433 = vset.pattern.permute.xlu1 %v549_v1  ;;  %vm48_vm0 = vcmp.gt.s32.totalorder %v47_v3, 0  ;;  %v436_v4 = vld [vmem:[#allocation2 + $0x4] ss:$8 sps:$4 sm:$0xff]   ;;  %v438_v5 = vld [vmem:[#allocation2] ss:$8 sps:$4 sm:$0xff]   ;;  %v551_v16 = vmov 1  }
  0x29   :  { %214 = vmatprep.mubr.bf16.mxu0 %v548_v0  ;;  %398 = vmatprep.subr.bf16.mxu1 %v550_v2  ;;  %v49_v6 = vsel %vm48_vm0, %v47_v3, 0  ;;  %v439_v7 = vld [vmem:[#allocation2 + $0x14] ss:$8 sps:$4 sm:$0xff]   ;;  %v441_v9 = vld [vmem:[#allocation2 + $0x10] ss:$8 sps:$4 sm:$0xff]   ;;  %v552_v18 = vmov 3  }
  0x2a   :  { %vm50_vm1 = vcmp.lt.s32.totalorder %v49_v6, 31  ;;  %182 = vmatprep.subr.bf16.mxu0 %v436_v4  ;;  %v442_v11 = vld [vmem:[#allocation2 + $0x24] ss:$8 sps:$4 sm:$0xff]   ;;  %v444_v14 = vld [vmem:[#allocation2 + $0x20] ss:$8 sps:$4 sm:$0xff]   ;;  %v462_v28 = vld [vmem:[#allocation5 + $0x10] sm:$0xff]  }
  0x2b   :  { %v51_v8 = vsel %vm50_vm1, %v49_v6, 31  ;;  %183 = vmatpush1.bf16.msra.mxu0 %v438_v5  ;;  %v445_v15 = vld [vmem:[#allocation2 + $0x34] ss:$8 sps:$4 sm:$0xff]   ;;  %v447_v17 = vld [vmem:[#allocation2 + $0x30] ss:$8 sps:$4 sm:$0xff]   ;;  %v460_v23 = vld [vmem:[#allocation5] sm:$0xff]  }
  0x2c   :  { %55 = vperm.xlu0 %431, %v51_v8   ;;  %v69_v10 = vadd.s32 64, %v51_v8  ;;  %184 = vmatprep.subr.bf16.mxu0 %v439_v7  ;;  %v61_v12 = vadd.s32 32, %v51_v8  ;;  %v77_v13 = vadd.s32 96, %v51_v8  ;;  %v448_v19 = vld [vmem:[#allocation2 + $0x44] ss:$8 sps:$4 sm:$0xff]   ;;  %v463_v30 = vld [vmem:[#allocation5 + $0x18] sm:$0xff]  }
  0x2d   :  { %v450_v20 = vld [vmem:[#allocation2 + $0x40] ss:$8 sps:$4 sm:$0xff]   ;;  %v451_v21 = vld [vmem:[#allocation2 + $0x54] ss:$8 sps:$4 sm:$0xff]   ;;  %v453_v22 = vld [vmem:[#allocation2 + $0x50] ss:$8 sps:$4 sm:$0xff]   ;;  %399 = vmatpush3.bf16.msra.mxu1 %v460_v23 }
  0x2e   :  { %71 = vperm.xlu1 %433, %v69_v10   ;;  %v454_v24 = vld [vmem:[#allocation2 + $0x64] ss:$8 sps:$4 sm:$0xff]   ;;  %400 = vmatprep.subr.bf16.mxu1 %v550_v2  ;;  %v456_v26 = vld [vmem:[#allocation2 + $0x60] ss:$8 sps:$4 sm:$0xff]   ;;  %v457_v27 = vld [vmem:[#allocation2 + $0x74] ss:$8 sps:$4 sm:$0xff]  }
  0x2f   :  { %185 = vmatpush1.bf16.msra.mxu0 %v441_v9  ;;  %v461_v25 = vld [vmem:[#allocation5 + $0x8] sm:$0xff]   ;;  %v459_v29 = vld [vmem:[#allocation2 + $0x70] ss:$8 sps:$4 sm:$0xff]   ;;  %v53_v32 = vand.u32 127, %v52_v31  ;;  %v464_v45 = vld [vmem:[#allocation5 + $0x20] sm:$0xff]   ;;  %vm553_vm6 = vmmov 0  }
  0x30   :  { %432 = vset.pattern.permute.xlu0 %v551_v16  ;;  %186 = vmatprep.subr.bf16.mxu0 %v442_v11  ;;  %v465_v46 = vld [vmem:[#allocation5 + $0x28] sm:$0xff]   ;;  %v466_v47 = vld [vmem:[#allocation5 + $0x30] sm:$0xff]   ;;  %v467_v48 = vld [vmem:[#allocation5 + $0x38] sm:$0xff]   ;;  %s554_s20 = smov [#allocation7]  }
  0x31   :  { %63 = vperm.xlu0 %432, %v61_v12   ;;  %401 = vmatpush3.bf16.msra.mxu1 %v461_v25  ;;  %v379_v49 = vld [vmem:[%s641_s3] ss:$0 sm:$0xff]  ;;  %v388_v57 = vld [vmem:[%s641_s3 + $0x1] ss:$0 sm:$0xff]  ;;  %s349_s21 = sshll.u32 %s554_s20, 4  ;;  %s350_s21 = int_to_ptr.vmem [resolvable:$true] %s349_s21 }
  0x32   :  { %434 = vset.pattern.permute.xlu1 %v552_v18  ;;  %402 = vmatprep.subr.bf16.mxu1 %v550_v2  ;;  %s514_s22 = scalar_lea.vmem %s350_s21, 128  ;;  %p519_p3 = scmp.lt.s32.totalorder %s350_s21, %s350_s21 }
  0x33   :  { %79 = vperm.xlu1 %434, %v77_v13   ;;  %187 = vmatpush1.bf16.msra.mxu0 %v444_v14  ;;  %p515_p2 = scmp.ne.s32.totalorder %s350_s21, %s514_s22  ;;  %p520_p4 = scmp.lt.s32.totalorder %s514_s22, %s514_s22 }
  0x34   :  { %188 = vmatprep.subr.bf16.mxu0 %v445_v15  ;;  %414 = vmatprep.mubr.msk.bf16.mxu1 %vm553_vm6, %v550_v2 }
  0x35   :  { %435 = vset.pattern.permute.xlu0 %v552_v18  ;;  %403 = vmatpush3.bf16.msra.mxu1 %v462_v28  ;;  %p521_p5 = por %p520_p4, %p519_p3 }
  0x36   :  { %404 = vmatprep.subr.bf16.mxu1 %v550_v2 }
  0x37   :  { %189 = vmatpush1.bf16.msra.mxu0 %v447_v17  ;;  %p522_p6 = pnand %p521_p5, %p515_p2 }
  0x38   :  { %190 = vmatprep.subr.bf16.mxu0 %v448_v19 }
  0x39   :  { %405 = vmatpush3.bf16.msra.mxu1 %v463_v30 }
  0x3a   :  { %406 = vmatprep.subr.bf16.mxu1 %v550_v2 }
  0x3b   :  { %191 = vmatpush1.bf16.msra.mxu0 %v450_v20 }
  0x3c   :  { %192 = vmatprep.subr.bf16.mxu0 %v451_v21 }
  0x3d   :  { %407 = vmatpush3.bf16.msra.mxu1 %v464_v45 }
  0x3e   :  { %408 = vmatprep.subr.bf16.mxu1 %v550_v2 }
  0x3f   :  { %193 = vmatpush1.bf16.msra.mxu0 %v453_v22 }
  0x40   :  { %194 = vmatprep.subr.bf16.mxu0 %v454_v24 }
  0x41   :  { %409 = vmatpush3.bf16.msra.mxu1 %v465_v46 }
  0x42   :  { %410 = vmatprep.subr.bf16.mxu1 %v550_v2 }
  0x43   :  { %195 = vmatpush1.bf16.msra.mxu0 %v456_v26 }
  0x44   :  { %196 = vmatprep.subr.bf16.mxu0 %v457_v27 }
  0x45   :  { %411 = vmatpush3.bf16.msra.mxu1 %v466_v47 }
  0x46   :  { %412 = vmatprep.subr.bf16.mxu1 %v550_v2 }
  0x47   :  { %197 = vmatpush1.bf16.msra.mxu0 %v459_v29 }
  0x49   :  { %413 = vmatpush3.bf16.msra.mxu1 %v467_v48 }
  0xab   :  { %v56_v33 = vpop.permute.xlu0 %55 }
  0xac   :  { %vm57_vm2 = vcmp.eq.s32.totalorder %v53_v32, %v56_v33 }
  0xad   :  { %v72_v34 = vpop.permute.xlu1 %71  ;;  %v359_v36 = vsel %vm57_vm2, 1.0, %v550_v2 }
  0xae   :  { %vm73_vm3 = vcmp.eq.s32.totalorder %v53_v32, %v72_v34 }
  0xaf   :  { %v361_v40 = vsel %vm73_vm3, 1.0, %v550_v2 }
  0xb0   :  { %v64_v35 = vpop.permute.xlu0 %63 }
  0xb1   :  { %vm65_vm4 = vcmp.eq.s32.totalorder %v53_v32, %v64_v35 }
  0xb2   :  { %v360_v37 = vsel %vm65_vm4, 1.0, %v550_v2  ;;  %v80_v38 = vpop.permute.xlu1 %79 }
  0xb3   :  { %v68_v39 = vadd.f32 %v360_v37, %v359_v36  ;;  %vm81_vm5 = vcmp.eq.s32.totalorder %v53_v32, %v80_v38 }
  0xb4   :  { %v362_v41 = vsel %vm81_vm5, 1.0, %v550_v2 }
  0xb5   :  { %v76_v42 = vadd.f32 %v361_v40, %v68_v39 }
  0xb7   :  { %v84_v43 = vadd.f32 %v362_v41, %v76_v42 }
  0xb9   :  { %v85_v44 = vpack.c.bf16 %v84_v43, %v84_v43 }
  0xbb   :  { %215 = vmatmul.mubr.bf16.vlgmr.msra.gmra.mrb[0].mxu0 %v85_v44 }
 0x18e   :  { %v216_v50 = vpop.f32.mrb[0].mxu0 }
 0x18f   :  { %v229_v51 = vadd.f32 %v379_v49, %v216_v50  ;;  %v218_v52 = vpop.f32.mrb[1].mxu0 }
 0x190   :  { %v220_v53 = vpop.f32.mrb[2].mxu0  ;;  %v340_v58 = vadd.f32 %v388_v57, %v218_v52 }
 0x191   :  { %468 = vtanh.f32 %v229_v51  ;;  %v221_v54 = vpop.f32.mrb[3].mxu0 }
 0x19b   :  { %v469_v55 = vpop.eup %468 }
 0x19c   :  { %v231_v56 = vpack.c.bf16 %v469_v55, %v469_v55 }
 0x19e   :  { %415 = vmatmul.mubr.bf16.vlgmr.msra.gmra.mrb[0].mxu1 %v231_v56 }
 0x271   :  { %v330_v59 = vpop.f32.mrb[0].mxu1 }
 0x272   :  { %v341_v60 = vadd.f32 %v340_v58, %v330_v59  ;;  %v416_v61 = vpop.f32.mrb[1].mxu1 }
 0x273   :  { %v333_v62 = vpop.f32.mrb[2].mxu1 }
 0x274   :  { %342 = vst [vmem:[#allocation7] sm:$0xff] %v341_v60  ;;  %v417_v63 = vpop.f32.mrb[3].mxu1 }
 0x275   :  { %525 = shalt.err (!%p522_p6)
}
 0x276   :  { %s526_s3 = scalar_lea.hbm %s642_s4, 128 }
 0x277   :  { %p527_p7 = scmp.ne.s32.totalorder %s642_s4, %s526_s3  ;;  %p530_p8 = scmp.lt.u32.totalorder %s526_s3, %s642_s4 }
 0x279   :  { %p532_p9 = pnand %p530_p8, %p527_p7 }
 0x27b   :  { %535 = shalt.err (!%p532_p9)
}
 0x27c   :  { %352 = dma.vmem_to_hbm [thread:$0]  %s350_s21, 128, %s642_s4, [#allocation4]  }
 0x27d   :  { %540 = dma.done.wait [#allocation4], 128  }
 0x27e   :  { %541 = vsyncadd [#allocation4], 4294967168 }
 0x27f   :  { %356 = vsyncpa [#allocation3], 1 }
 0x280   :  { %357 = vsyncpa [#allocation6], 1 }
 0x281   :  { %358 = vsyncpa [#allocation4], 1 }

</bundles_post_ra>
